<compile_context>
chip_gen: v6e
topology: v6e:2x2x1
jax: 0.10.0
libtpu: 0.0.40
codegen_flags: <defaults>
</compile_context>

<pallas_src>
import functools

import numpy as np
import jax
import jax.numpy as jnp
from jax.experimental import pallas as pl
from jax.experimental.pallas import tpu as pltpu

EPS = 1e-6
LANE = 128            # lane width (last dim of the in-kernel layout)
MAX_TILE_ROWS = 1024  # 1024 x 128 f32 = 512 KiB per block (double-buffered)
_VMEM_LIMIT = 32 * 1024 * 1024


def _ceil_div(a, b):
    return -(-a // b)


# ---------------------------------------------------------------------------
# Pass 1: streaming reduction -> per-lane partial sums of x and x^2
# ---------------------------------------------------------------------------
def _reduce_kernel(x_ref, sum_ref, sumsq_ref, *, valid_rows, tile_rows, num_tiles):
    t = pl.program_id(0)

    @pl.when(t == 0)
    def _init():
        sum_ref[...] = jnp.zeros_like(sum_ref)
        sumsq_ref[...] = jnp.zeros_like(sumsq_ref)

    def _accumulate(x):
        # Sublane (row) reduction only; the final 128-lane reduce happens in
        # the tiny XLA epilogue outside the kernel.
        sum_ref[...] += jnp.sum(x, axis=0, keepdims=True)
        sumsq_ref[...] += jnp.sum(x * x, axis=0, keepdims=True)

    ragged = (valid_rows % tile_rows) != 0  # static Python bool
    if not ragged:
        _accumulate(x_ref[...].astype(jnp.float32))
    else:
        # Only large row-ragged tensors reach here; mask garbage rows of the
        # final tile only (all other tiles stay pure load + FMA).
        last = num_tiles - 1

        @pl.when(t != last)
        def _full():
            _accumulate(x_ref[...].astype(jnp.float32))

        @pl.when(t == last)
        def _tail():
            x = x_ref[...].astype(jnp.float32)
            rows_left = valid_rows - last * tile_rows  # static int
            row_idx = jax.lax.broadcasted_iota(jnp.int32, x.shape, 0)
            _accumulate(jnp.where(row_idx < rows_left, x, jnp.float32(0.0)))


# ---------------------------------------------------------------------------
# Pass 2: streaming normalization (parallel over tiles)
# ---------------------------------------------------------------------------
def _normalize_kernel(stats_ref, x_ref, o_ref):
    mean = stats_ref[0]   # SMEM scalars
    rstd = stats_ref[1]
    o_ref[...] = ((x_ref[...].astype(jnp.float32) - mean) * rstd).astype(o_ref.dtype)


# ---------------------------------------------------------------------------
# Wrapper
# ---------------------------------------------------------------------------
def global_normalization(x, epsilon=EPS):
    orig_shape = x.shape
    orig_dtype = x.dtype
    assert jnp.issubdtype(orig_dtype, jnp.floating), "expects a floating input"
    n = int(np.prod(orig_shape))
    itemsize = jnp.dtype(orig_dtype).itemsize

    lane_aligned = (n % LANE == 0)
    if lane_aligned:
        rows = n // LANE
        x2d = x.reshape(rows, LANE)            # layout-only reshape, no copy
    else:
        rows = _ceil_div(n, LANE)
        x2d = jnp.pad(x.reshape(-1), (0, rows * LANE - n)).reshape(rows, LANE)

    # Tile choice: full extent for small tensors (block == array dims is always
    # legal), MAX_TILE_ROWS (multiple of 8/16 sublane packing) when streaming.
    tile_rows = rows if rows <= MAX_TILE_ROWS else MAX_TILE_ROWS
    num_tiles = _ceil_div(rows, tile_rows)

    # ---- Pass 1: per-lane partial sums, sequential accumulation over tiles ----
    reduce_kernel = functools.partial(
        _reduce_kernel, valid_rows=rows, tile_rows=tile_rows, num_tiles=num_tiles)
    lane_sum, lane_sumsq = pl.pallas_call(
        reduce_kernel,
        grid=(num_tiles,),
        in_specs=[pl.BlockSpec((tile_rows, LANE), lambda t: (t, 0))],
        out_specs=(pl.BlockSpec((1, LANE), lambda t: (0, 0)),
                   pl.BlockSpec((1, LANE), lambda t: (0, 0))),
        out_shape=(jax.ShapeDtypeStruct((1, LANE), jnp.float32),
                   jax.ShapeDtypeStruct((1, LANE), jnp.float32)),
        compiler_params=pltpu.CompilerParams(
            dimension_semantics=("arbitrary",),
            vmem_limit_bytes=_VMEM_LIMIT),
        cost_estimate=pl.CostEstimate(
            flops=3 * n, transcendentals=0,
            bytes_accessed=n * itemsize + 2 * LANE * 4),
    )(x2d)

    # Tiny scalar epilogue (two 128-wide sums + a handful of scalar ops).
    # Zero-padded / masked slots contributed 0, so dividing by the true n is
    # exact — no padding correction needed.
    inv_n = jnp.float32(1.0 / n)
    mean = jnp.sum(lane_sum) * inv_n
    var = jnp.maximum(jnp.sum(lane_sumsq) * inv_n - mean * mean, jnp.float32(0.0))
    rstd = jax.lax.rsqrt(var + jnp.float32(epsilon))
    stats = jnp.stack([mean, rstd]).astype(jnp.float32)   # (2,) -> SMEM scalars

    # ---- Pass 2: normalize; tiles are independent -> "parallel" (v7x megacore) ----
    out2d = pl.pallas_call(
        _normalize_kernel,
        grid=(num_tiles,),
        in_specs=[pl.BlockSpec(memory_space=pltpu.MemorySpace.SMEM),
                  pl.BlockSpec((tile_rows, LANE), lambda t: (t, 0))],
        out_specs=pl.BlockSpec((tile_rows, LANE), lambda t: (t, 0)),
        out_shape=jax.ShapeDtypeStruct((rows, LANE), orig_dtype),
        compiler_params=pltpu.CompilerParams(
            dimension_semantics=("parallel",),
            vmem_limit_bytes=_VMEM_LIMIT),
        cost_estimate=pl.CostEstimate(
            flops=2 * n, transcendentals=0,
            bytes_accessed=2 * n * itemsize),
    )(stats, x2d)

    if lane_aligned:
        return out2d.reshape(orig_shape)
    return out2d.reshape(-1)[:n].reshape(orig_shape)


# ---------------------------------------------------------------------------
# Pure-JAX reference (two-pass, like torch.var_mean(unbiased=False))
# ---------------------------------------------------------------------------
def reference_forward(x, epsilon=EPS):
    xf = x.astype(jnp.float32)
    mean = jnp.mean(xf)
    var = jnp.mean(jnp.square(xf - mean))
    return ((xf - mean) * jax.lax.rsqrt(var + epsilon)).astype(x.dtype)


if __name__ == "__main__":
    key = jax.random.PRNGKey(0)
    k0, k1, k2, k3 = jax.random.split(key, 4)

    cases = [
        # lane-aligned f32: no pad, no slice, no converts anywhere.
        ("aligned_f32",
         3.0 + 2.5 * jax.random.normal(k0, (2, 4, 16, 16), jnp.float32), 1e-4),
        # ragged numel: exercises the pad fallback path.
        ("ragged_f32",
         -1.0 + 0.7 * jax.random.normal(k1, (3, 5, 7, 11), jnp.float32), 1e-4),
        # 2048 rows -> two pipelined tiles (streaming + parallel normalize).
        ("two_tile_f32",
         0.5 + 1.3 * jax.random.normal(k2, (8, 8, 64, 64), jnp.float32), 1e-4),
        # native bf16 HBM I/O, f32 accumulation in-kernel.
        ("aligned_bf16",
         (2.0 + 1.5 * jax.random.normal(k3, (2, 4, 16, 16), jnp.float32)
          ).astype(jnp.bfloat16), 8e-2),
    ]

    for name, x, tol in cases:
        out = jax.block_until_ready(global_normalization(x))
        ref = jax.block_until_ready(reference_forward(x))
        assert out.shape == x.shape, (name, out.shape, x.shape)
        assert out.dtype == x.dtype, (name, out.dtype, x.dtype)
        err = float(jnp.max(jnp.abs(out.astype(jnp.float32) - ref.astype(jnp.float32))))
        assert err < tol, f"{name}: max abs err {err} >= {tol}"

    print("KERNEL_OK")
</pallas_src>

<mosaic_0001>
module attributes {stable_mosaic.version = 11 : i64} {
  func.func @_reduce_kernel(%arg0: i32, %arg1: memref<16x128xf32, #tpu.memory_space<vmem>>, %arg2: memref<1x128xf32, #tpu.memory_space<vmem>>, %arg3: memref<1x128xf32, #tpu.memory_space<vmem>>) attributes {dimension_semantics = [#tpu.dimension_semantics<arbitrary>], iteration_bounds = array<i64: 1>, scalar_prefetch = 0 : i64, scratch_operands = 0 : i64, tpu.core_type = #tpu.core_type<tc>, window_params = [{transform_indices = @transform_0, window_bounds = array<i64: 16, 128>}, {pipeline_mode = #tpu.pipeline_mode<synchronous>, transform_indices = @transform_1, window_bounds = array<i64: 1, 128>}, {pipeline_mode = #tpu.pipeline_mode<synchronous>, transform_indices = @transform_2, window_bounds = array<i64: 1, 128>}]} {
    %c0_i32 = arith.constant 0 : i32
    %0 = arith.cmpi eq, %arg0, %c0_i32 : i32
    %1 = arith.extui %0 : i1 to i32
    %c0_i32_0 = arith.constant 0 : i32
    %2 = arith.cmpi ne, %1, %c0_i32_0 : i32
    scf.if %2 {
      %cst_11 = arith.constant 0.000000e+00 : f32
      %15 = vector.broadcast %cst_11 : f32 to vector<1x128xf32>
      %c0_12 = arith.constant 0 : index
      %c0_13 = arith.constant 0 : index
      %16 = vector.load %arg2[%c0_12, %c0_13] : memref<1x128xf32, #tpu.memory_space<vmem>>, vector<1x128xf32>
      tpu.vector_store %arg2[%c0_12, %c0_13], %15 {strides = array<i32>} : memref<1x128xf32, #tpu.memory_space<vmem>>, vector<1x128xf32>,
      %cst_14 = arith.constant 0.000000e+00 : f32
      %17 = vector.broadcast %cst_14 : f32 to vector<1x128xf32>
      %c0_15 = arith.constant 0 : index
      %c0_16 = arith.constant 0 : index
      %18 = vector.load %arg3[%c0_15, %c0_16] : memref<1x128xf32, #tpu.memory_space<vmem>>, vector<1x128xf32>
      tpu.vector_store %arg3[%c0_15, %c0_16], %17 {strides = array<i32>} : memref<1x128xf32, #tpu.memory_space<vmem>>, vector<1x128xf32>,
    } else {
    }
    %c0 = arith.constant 0 : index
    %c0_1 = arith.constant 0 : index
    %3 = vector.load %arg1[%c0, %c0_1] : memref<16x128xf32, #tpu.memory_space<vmem>>, vector<16x128xf32>
    %c0_2 = arith.constant 0 : index
    %c0_3 = arith.constant 0 : index
    %4 = vector.load %arg2[%c0_2, %c0_3] : memref<1x128xf32, #tpu.memory_space<vmem>>, vector<1x128xf32>
    %cst = arith.constant dense<0.000000e+00> : vector<128xf32>
    %5 = vector.multi_reduction <add>, %3, %cst [0] : vector<16x128xf32> to vector<128xf32>
    %6 = vector.shape_cast %5 : vector<128xf32> to vector<1x128xf32>
    %7 = arith.addf %4, %6 : vector<1x128xf32>
    %c0_4 = arith.constant 0 : index
    %c0_5 = arith.constant 0 : index
    %8 = vector.load %arg2[%c0_4, %c0_5] : memref<1x128xf32, #tpu.memory_space<vmem>>, vector<1x128xf32>
    tpu.vector_store %arg2[%c0_4, %c0_5], %7 {strides = array<i32>} : memref<1x128xf32, #tpu.memory_space<vmem>>, vector<1x128xf32>,
    %c0_6 = arith.constant 0 : index
    %c0_7 = arith.constant 0 : index
    %9 = vector.load %arg3[%c0_6, %c0_7] : memref<1x128xf32, #tpu.memory_space<vmem>>, vector<1x128xf32>
    %10 = arith.mulf %3, %3 : vector<16x128xf32>
    %cst_8 = arith.constant dense<0.000000e+00> : vector<128xf32>
    %11 = vector.multi_reduction <add>, %10, %cst_8 [0] : vector<16x128xf32> to vector<128xf32>
    %12 = vector.shape_cast %11 : vector<128xf32> to vector<1x128xf32>
    %13 = arith.addf %9, %12 : vector<1x128xf32>
    %c0_9 = arith.constant 0 : index
    %c0_10 = arith.constant 0 : index
    %14 = vector.load %arg3[%c0_9, %c0_10] : memref<1x128xf32, #tpu.memory_space<vmem>>, vector<1x128xf32>
    tpu.vector_store %arg3[%c0_9, %c0_10], %13 {strides = array<i32>} : memref<1x128xf32, #tpu.memory_space<vmem>>, vector<1x128xf32>,
    return
  }
  func.func @transform_0(%arg0: i32) -> (i32, i32) {
    %c0_i32 = arith.constant 0 : i32
    %c0_i32_0 = arith.constant 0 : i32
    return %arg0, %c0_i32 : i32, i32
  }
  func.func @transform_1(%arg0: i32) -> (i32, i32) {
    %c0_i32 = arith.constant 0 : i32
    %c0_i32_0 = arith.constant 0 : i32
    %c0_i32_1 = arith.constant 0 : i32
    return %c0_i32, %c0_i32_0 : i32, i32
  }
  func.func @transform_2(%arg0: i32) -> (i32, i32) {
    %c0_i32 = arith.constant 0 : i32
    %c0_i32_0 = arith.constant 0 : i32
    %c0_i32_1 = arith.constant 0 : i32
    return %c0_i32, %c0_i32_0 : i32, i32
  }
}

</mosaic_0001>

<bundles_post_ra>
// kernel: tpu_custom_call.1
= control target key start
LH: loop header
LB: loop body
LE: loop exit
PB: predicated region body
PF: predicated region fallthrough
CT: control target
= control target key end

     0   :  { %8 = vsyncpa [#allocation3], 0  ;;  %s187_s0 = inlined_call_operand.hbm [shape: f32[16,128], index: 0, kind: input, shape index: {}]   ;;  %s188_s1 = inlined_call_operand.hbm [shape: f32[1,128], index: 1, kind: output, shape index: {0}]   ;;  %s189_s2 = inlined_call_operand.hbm [shape: f32[1,128], index: 2, kind: output, shape index: {1}]  }
   0x1   :  { %9 = vsyncpa [#allocation4], 0 }
   0x2   :  { %10 = vsyncpa [#allocation7], 0  ;;  %s157_s9 = smov [#allocation2]  }
   0x3   :  { %s16_s10 = sshll.u32 %s157_s9, 4  ;;  %s17_s10 = int_to_ptr.vmem [resolvable:$true] %s16_s10 }
   0x4   :  { %s99_s11 = scalar_lea.vmem %s17_s10, 256  ;;  %p104_p1 = scmp.lt.s32.totalorder %s17_s10, %s17_s10 }
   0x5   :  { %p100_p0 = scmp.ne.s32.totalorder %s17_s10, %s99_s11  ;;  %p105_p2 = scmp.lt.s32.totalorder %s99_s11, %s99_s11 }
   0x7   :  { %p106_p3 = por %p105_p2, %p104_p1 }
   0x9   :  { %p107_p4 = pnand %p106_p3, %p100_p0 }
   0xb   :  { %110 = shalt.err (!%p107_p4)
}
   0xc   :  { %s158_s12 = smov 128   ;;  %s159_s13 = smov 8  }
   0xd   :  { %22 = dma.hbm_to_vmem [thread:$0]  %s187_s0, 256, %s17_s10, [#allocation3], %s158_s12, %s158_s12, %s159_s13  }
   0xe   :  { %151 = dma.done.wait [#allocation3], 256  }
   0xf   :  { %152 = vsyncadd [#allocation3], 4294967040  ;;  %v160_v0 = vmov 0.0   ;;  %v32_v1 = vld [vmem:[#allocation2] sm:$0xff]  ;;  %v33_v2 = vld [vmem:[#allocation2 + $0x8] sm:$0xff]  ;;  %s161_s0 = smov [#allocation5]  }
  0x10   :  { %30 = vst [vmem:[#allocation5] sm:$0x1] %v160_v0  ;;  %31 = vst [vmem:[#allocation6] sm:$0x1] %v160_v0  ;;  %v35_v3 = vadd.f32 %v33_v2, %v32_v1  ;;  %v45_v4 = vmul.f32 %v32_v1, %v32_v1  ;;  %v46_v5 = vmul.f32 %v33_v2, %v33_v2  ;;  %s62_s16 = sshll.u32 %s161_s0, 4  ;;  %s162_s17 = smov [#allocation6]   ;;  %s63_s16 = int_to_ptr.vmem [resolvable:$true] %s62_s16 }
  0x11   :  { %s72_s18 = sshll.u32 %s162_s17, 4  ;;  %s111_s19 = scalar_lea.vmem %s63_s16, 16  ;;  %s73_s18 = int_to_ptr.vmem [resolvable:$true] %s72_s18 }
  0x12   :  { %v36_v6 = vrot.slane %v35_v3, 4  ;;  %v47_v7 = vadd.f32 %v46_v5, %v45_v4  ;;  %p112_p5 = scmp.ne.s32.totalorder %s63_s16, %s111_s19  ;;  %s115_s20 = scalar_lea.vmem %s63_s16, 32 }
  0x13   :  { %p116_p6 = scmp.lt.s32.totalorder %s63_s16, %s63_s16  ;;  %p117_p7 = scmp.lt.s32.totalorder %s115_s20, %s111_s19 }
  0x14   :  { %v37_v8 = vadd.f32 %v36_v6, %v35_v3  ;;  %v48_v9 = vrot.slane %v47_v7, 4 }
  0x15   :  { %p118_p8 = por %p117_p7, %p116_p6 }
  0x16   :  { %v38_v10 = vrot.slane %v37_v8, 2  ;;  %v49_v11 = vadd.f32 %v48_v9, %v47_v7 }
  0x17   :  { %v34_v16 = vld [vmem:[#allocation5] sm:$0x1]  ;;  %v44_v19 = vld [vmem:[#allocation6] sm:$0x1]  ;;  %p119_p9 = pnand %p118_p8, %p112_p5 }
  0x18   :  { %v39_v12 = vadd.f32 %v38_v10, %v37_v8  ;;  %v50_v13 = vrot.slane %v49_v11, 2 }
  0x1a   :  { %v40_v14 = vrot.slane %v39_v12, 1  ;;  %v51_v15 = vadd.f32 %v50_v13, %v49_v11 }
  0x1c   :  { %v41_v17 = vadd.f32 %v40_v14, %v39_v12  ;;  %v52_v18 = vrot.slane %v51_v15, 1 }
  0x1e   :  { %v42_v20 = vadd.f32 %v41_v17, %v34_v16  ;;  %v53_v21 = vadd.f32 %v52_v18, %v51_v15 }
  0x20   :  { %43 = vst [vmem:[#allocation5] sm:$0x1] %v42_v20  ;;  %v54_v22 = vadd.f32 %v53_v21, %v44_v19 }
  0x21   :  { %122 = shalt.err (!%p119_p9)
}
  0x22   :  { %65 = dma.vmem_to_hbm [thread:$0]  %s63_s16, 16, %s188_s1, [#allocation4]   ;;  %55 = vst [vmem:[#allocation6] sm:$0x1] %v54_v22 }
  0x23   :  { %s131_s23 = scalar_lea.vmem %s73_s18, 16  ;;  %s135_s24 = scalar_lea.vmem %s73_s18, 32 }
  0x24   :  { %p132_p10 = scmp.ne.s32.totalorder %s73_s18, %s131_s23  ;;  %p136_p11 = scmp.lt.s32.totalorder %s73_s18, %s73_s18 }
  0x25   :  { %p137_p12 = scmp.lt.s32.totalorder %s135_s24, %s131_s23 }
  0x27   :  { %p138_p13 = por %p137_p12, %p136_p11 }
  0x29   :  { %p139_p0 = pnand %p138_p13, %p132_p10 }
  0x2b   :  { %142 = shalt.err (!%p139_p0)
}
  0x2c   :  { %75 = dma.vmem_to_hbm [thread:$0]  %s73_s18, 16, %s189_s2, [#allocation7]  }
  0x2d   :  { %153 = dma.done.wait [#allocation4], 16  }
  0x2e   :  { %154 = vsyncadd [#allocation4], 4294967280 }
  0x2f   :  { %155 = dma.done.wait [#allocation7], 16  }
  0x30   :  { %156 = vsyncadd [#allocation7], 4294967280 }
  0x31   :  { %82 = vsyncpa [#allocation3], 1 }
  0x32   :  { %83 = vsyncpa [#allocation4], 1 }
  0x33   :  { %84 = vsyncpa [#allocation7], 1 }

</bundles_post_ra>
